<compile_context>
chip_gen: v5e
topology: v5e:2x2
jax: 0.10.0
libtpu: 0.0.40
codegen_flags: <defaults>
</compile_context>

<pallas_src>
import functools

import jax
import jax.numpy as jnp
from jax.experimental import pallas as pl
from jax.experimental.pallas import tpu as pltpu

LANE = 128
CHUNK_ROWS = 32            # rows folded per unrolled step; accumulators are (chunk, 128)
TILE_ROWS_MAX = 2048       # (2048, 128) f32 tile = 1 MiB; x2 arrays x2 buffers = 4 MiB VMEM
EPSILON = 1e-6             # matches the PyTorch module


def _logcosh_loss_kernel(x_ref, y_ref, out_ref,
                         minx_acc, miny_acc, sumsq_acc,
                         *, n_valid, tile_rows, chunk, eps):
    ph = pl.program_id(0)          # 0 = min pass, 1 = log-diff pass
    t = pl.program_id(1)           # tile index
    nt = pl.num_programs(1)
    last = nt - 1

    full_rows = n_valid // LANE    # static python ints
    rem_lanes = n_valid % LANE
    shift = 1.0 + eps

    def chunk_mask(r):
        # Validity of the chunk starting at row `r` of the current (last) tile.
        # Compare row indices, not flat element indices -> no int32 overflow.
        row = jax.lax.broadcasted_iota(jnp.int32, (chunk, LANE), 0)
        grow = t * tile_rows + r + row
        valid = grow < full_rows
        if rem_lanes:
            lane = jax.lax.broadcasted_iota(jnp.int32, (chunk, LANE), 1)
            valid = valid | ((grow == full_rows) & (lane < rem_lanes))
        return valid

    @pl.when((ph == 0) & (t == 0))
    def _init():
        inf_tile = jnp.full((chunk, LANE), jnp.inf, dtype=jnp.float32)
        minx_acc[...] = inf_tile
        miny_acc[...] = inf_tile
        sumsq_acc[...] = jnp.zeros((chunk, LANE), dtype=jnp.float32)

    # ---- phase 0: running elementwise minima --------------------------------
    def min_update(masked):
        mx = minx_acc[...]
        my = miny_acc[...]
        for r in range(0, tile_rows, chunk):
            xv = x_ref[r:r + chunk, :]
            yv = y_ref[r:r + chunk, :]
            if masked:
                v = chunk_mask(r)
                xv = jnp.where(v, xv, jnp.inf)
                yv = jnp.where(v, yv, jnp.inf)
            mx = jnp.minimum(mx, xv)
            my = jnp.minimum(my, yv)
        return mx, my

    @pl.when((ph == 0) & (t != last))
    def _min_mid():
        mx, my = min_update(masked=False)
        minx_acc[...] = mx
        miny_acc[...] = my

    @pl.when((ph == 0) & (t == last))
    def _min_last():
        # Fold the (possibly ragged) last tile, then hoist the phase-1
        # constants: the min accumulators are re-used to cache
        #   cx = |min(input)|  + 1 + eps,  cy = |min(target)| + 1 + eps
        # as broadcast tiles, so phase 1 only loads them once per tile.
        mx, my = min_update(masked=True)
        cx = jnp.abs(jnp.min(mx)) + shift
        cy = jnp.abs(jnp.min(my)) + shift
        minx_acc[...] = jnp.broadcast_to(cx, (chunk, LANE))
        miny_acc[...] = jnp.broadcast_to(cy, (chunk, LANE))

    # ---- phase 1: running sum of squared log-differences --------------------
    def sumsq_update(masked):
        cx = minx_acc[...]          # broadcast constant tiles (from _min_last)
        cy = miny_acc[...]
        s = sumsq_acc[...]
        for r in range(0, tile_rows, chunk):
            xv = x_ref[r:r + chunk, :]
            yv = y_ref[r:r + chunk, :]
            # log(a) - log(b) == log(a / b): one transcendental instead of two.
            d = jnp.log((xv + cx) / (yv + cy))
            sq = d * d
            if masked:
                sq = jnp.where(chunk_mask(r), sq, 0.0)
            s = s + sq
        return s

    @pl.when((ph == 1) & (t != last))
    def _sum_mid():
        sumsq_acc[...] = sumsq_update(masked=False)

    @pl.when((ph == 1) & (t == last))
    def _sum_last():
        s = sumsq_update(masked=True)
        total = jnp.sum(s, axis=1, keepdims=True)       # (chunk, 1)
        total = jnp.sum(total, axis=0, keepdims=True)   # (1, 1)
        out_ref[...] = jnp.sqrt(total * (1.0 / n_valid))


def _choose_tiling(rows):
    """Pick (tile_rows, chunk) with tile_rows % chunk == 0 and chunk % 8 == 0
    (or chunk == rows for tiny inputs), respecting the (8, 128) constraint."""
    if rows >= CHUNK_ROWS:
        tile_rows = min(TILE_ROWS_MAX, (rows // CHUNK_ROWS) * CHUNK_ROWS)
        chunk = CHUNK_ROWS
    elif rows >= 8:
        tile_rows = (rows // 8) * 8
        chunk = 8
    else:                      # tiny input: single block equal to the array
        tile_rows = rows
        chunk = rows
    return tile_rows, chunk


def log_cosh_loss(inp, tgt, eps=EPSILON):
    """Pallas implementation of LogCoshLoss.forward. Returns a scalar f32."""
    assert inp.shape == tgt.shape, (inp.shape, tgt.shape)
    x = jnp.asarray(inp, jnp.float32).reshape(-1)
    y = jnp.asarray(tgt, jnp.float32).reshape(-1)
    n = x.shape[0]

    rows = -(-n // LANE)                 # ceil(n / 128)
    n_lane = rows * LANE
    if n_lane != n:                      # pad only to a lane multiple
        x = jnp.pad(x, (0, n_lane - n))
        y = jnp.pad(y, (0, n_lane - n))
    x2 = x.reshape(rows, LANE)
    y2 = y.reshape(rows, LANE)

    tile_rows, chunk = _choose_tiling(rows)
    num_tiles = -(-rows // tile_rows)    # ragged last block handled in-kernel

    kernel = functools.partial(
        _logcosh_loss_kernel, n_valid=n, tile_rows=tile_rows, chunk=chunk,
        eps=float(eps))

    out = pl.pallas_call(
        kernel,
        out_shape=jax.ShapeDtypeStruct((1, 1), jnp.float32),
        grid_spec=pltpu.PrefetchScalarGridSpec(
            num_scalar_prefetch=0,
            grid=(2, num_tiles),
            in_specs=[
                pl.BlockSpec((tile_rows, LANE), lambda ph, t: (t, 0)),
                pl.BlockSpec((tile_rows, LANE), lambda ph, t: (t, 0)),
            ],
            out_specs=pl.BlockSpec((1, 1), lambda ph, t: (0, 0)),
            scratch_shapes=[
                pltpu.VMEM((chunk, LANE), jnp.float32),   # min(input), then cx
                pltpu.VMEM((chunk, LANE), jnp.float32),   # min(target), then cy
                pltpu.VMEM((chunk, LANE), jnp.float32),   # sum of squared log-diffs
            ],
        ),
        compiler_params=pltpu.CompilerParams(
            # Phase 1 depends on phase-0 state and the (1,1) output block is
            # revisited every step -> both axes must stay "arbitrary".
            dimension_semantics=("arbitrary", "arbitrary"),
            vmem_limit_bytes=32 * 1024 * 1024),
        cost_estimate=pl.CostEstimate(
            flops=9 * n, transcendentals=2 * n, bytes_accessed=16 * n),
    )(x2, y2)
    return out[0, 0]


def _reference(inp, tgt, eps=EPSILON):
    """Plain-JAX port of the PyTorch LogCoshLoss.forward."""
    x = inp + jnp.abs(jnp.min(inp))
    y = tgt + jnp.abs(jnp.min(tgt))
    log_pred = jnp.log(x + 1.0 + eps)
    log_true = jnp.log(y + 1.0 + eps)
    return jnp.sqrt(jnp.mean((log_pred - log_true) ** 2))


if __name__ == "__main__":
    key = jax.random.PRNGKey(0)
    k1, k2 = jax.random.split(key)
    shape = (2, 4, 16, 16)
    inp = jax.random.normal(k1, shape, dtype=jnp.float32)
    tgt = jax.random.normal(k2, shape, dtype=jnp.float32)

    out = log_cosh_loss(inp, tgt)
    out = jax.block_until_ready(out)

    ref = _reference(inp, tgt)
    assert jnp.allclose(out, ref, rtol=1e-4, atol=1e-6), (out, ref)

    print("KERNEL_OK")
</pallas_src>

<mosaic_0001>
module attributes {stable_mosaic.version = 11 : i64} {
  func.func @_logcosh_loss_kernel(%arg0: i32, %arg1: i32, %arg2: memref<16x128xf32, #tpu.memory_space<vmem>>, %arg3: memref<16x128xf32, #tpu.memory_space<vmem>>, %arg4: memref<1x1xf32, #tpu.memory_space<vmem>>, %arg5: memref<8x128xf32, #tpu.memory_space<vmem>>, %arg6: memref<8x128xf32, #tpu.memory_space<vmem>>, %arg7: memref<8x128xf32, #tpu.memory_space<vmem>>) attributes {dimension_semantics = [#tpu.dimension_semantics<arbitrary>, #tpu.dimension_semantics<arbitrary>], iteration_bounds = array<i64: 2, 1>, scalar_prefetch = 0 : i64, scratch_operands = 3 : i64, tpu.core_type = #tpu.core_type<tc>, window_params = [{transform_indices = @transform_0, window_bounds = array<i64: 16, 128>}, {transform_indices = @transform_1, window_bounds = array<i64: 16, 128>}, {pipeline_mode = #tpu.pipeline_mode<synchronous>, transform_indices = @transform_2, window_bounds = array<i64: 1, 1>}]} {
    %c0_i32 = arith.constant 0 : i32
    %0 = arith.cmpi eq, %arg0, %c0_i32 : i32
    %c0_i32_0 = arith.constant 0 : i32
    %1 = arith.cmpi eq, %arg1, %c0_i32_0 : i32
    %2 = arith.andi %0, %1 : i1
    %3 = arith.extui %2 : i1 to i32
    %c0_i32_1 = arith.constant 0 : i32
    %4 = arith.cmpi ne, %3, %c0_i32_1 : i32
    scf.if %4 {
      %cst = arith.constant 0x7F800000 : f32
      %25 = vector.broadcast %cst : f32 to vector<8x128xf32>
      %c0 = arith.constant 0 : index
      %c0_13 = arith.constant 0 : index
      %26 = vector.load %arg5[%c0, %c0_13] : memref<8x128xf32, #tpu.memory_space<vmem>>, vector<8x128xf32>
      tpu.vector_store %arg5[%c0, %c0_13], %25 {strides = array<i32>} : memref<8x128xf32, #tpu.memory_space<vmem>>, vector<8x128xf32>,
      %c0_14 = arith.constant 0 : index
      %c0_15 = arith.constant 0 : index
      %27 = vector.load %arg6[%c0_14, %c0_15] : memref<8x128xf32, #tpu.memory_space<vmem>>, vector<8x128xf32>
      tpu.vector_store %arg6[%c0_14, %c0_15], %25 {strides = array<i32>} : memref<8x128xf32, #tpu.memory_space<vmem>>, vector<8x128xf32>,
      %cst_16 = arith.constant 0.000000e+00 : f32
      %28 = vector.broadcast %cst_16 : f32 to vector<8x128xf32>
      %c0_17 = arith.constant 0 : index
      %c0_18 = arith.constant 0 : index
      %29 = vector.load %arg7[%c0_17, %c0_18] : memref<8x128xf32, #tpu.memory_space<vmem>>, vector<8x128xf32>
      tpu.vector_store %arg7[%c0_17, %c0_18], %28 {strides = array<i32>} : memref<8x128xf32, #tpu.memory_space<vmem>>, vector<8x128xf32>,
    } else {
    }
    %c0_i32_2 = arith.constant 0 : i32
    %5 = arith.cmpi eq, %arg0, %c0_i32_2 : i32
    %c0_i32_3 = arith.constant 0 : i32
    %6 = arith.cmpi ne, %arg1, %c0_i32_3 : i32
    %7 = arith.andi %5, %6 : i1
    %8 = arith.extui %7 : i1 to i32
    %c0_i32_4 = arith.constant 0 : i32
    %9 = arith.cmpi ne, %8, %c0_i32_4 : i32
    scf.if %9 {
      %c0 = arith.constant 0 : index
      %c0_13 = arith.constant 0 : index
      %25 = vector.load %arg5[%c0, %c0_13] : memref<8x128xf32, #tpu.memory_space<vmem>>, vector<8x128xf32>
      %c0_14 = arith.constant 0 : index
      %c0_15 = arith.constant 0 : index
      %26 = vector.load %arg6[%c0_14, %c0_15] : memref<8x128xf32, #tpu.memory_space<vmem>>, vector<8x128xf32>
      %c0_16 = arith.constant 0 : index
      %c0_17 = arith.constant 0 : index
      %27 = vector.load %arg2[%c0_16, %c0_17] : memref<16x128xf32, #tpu.memory_space<vmem>>, vector<8x128xf32>
      %c0_18 = arith.constant 0 : index
      %c0_19 = arith.constant 0 : index
      %28 = vector.load %arg3[%c0_18, %c0_19] : memref<16x128xf32, #tpu.memory_space<vmem>>, vector<8x128xf32>
      %29 = arith.minimumf %25, %27 : vector<8x128xf32>
      %30 = arith.minimumf %26, %28 : vector<8x128xf32>
      %c8 = arith.constant 8 : index
      %c0_20 = arith.constant 0 : index
      %31 = vector.load %arg2[%c8, %c0_20] : memref<16x128xf32, #tpu.memory_space<vmem>>, vector<8x128xf32>
      %c8_21 = arith.constant 8 : index
      %c0_22 = arith.constant 0 : index
      %32 = vector.load %arg3[%c8_21, %c0_22] : memref<16x128xf32, #tpu.memory_space<vmem>>, vector<8x128xf32>
      %33 = arith.minimumf %29, %31 : vector<8x128xf32>
      %34 = arith.minimumf %30, %32 : vector<8x128xf32>
      %c0_23 = arith.constant 0 : index
      %c0_24 = arith.constant 0 : index
      %35 = vector.load %arg5[%c0_23, %c0_24] : memref<8x128xf32, #tpu.memory_space<vmem>>, vector<8x128xf32>
      tpu.vector_store %arg5[%c0_23, %c0_24], %33 {strides = array<i32>} : memref<8x128xf32, #tpu.memory_space<vmem>>, vector<8x128xf32>,
      %c0_25 = arith.constant 0 : index
      %c0_26 = arith.constant 0 : index
      %36 = vector.load %arg6[%c0_25, %c0_26] : memref<8x128xf32, #tpu.memory_space<vmem>>, vector<8x128xf32>
      tpu.vector_store %arg6[%c0_25, %c0_26], %34 {strides = array<i32>} : memref<8x128xf32, #tpu.memory_space<vmem>>, vector<8x128xf32>,
    } else {
    }
    %c0_i32_5 = arith.constant 0 : i32
    %10 = arith.cmpi eq, %arg0, %c0_i32_5 : i32
    %c0_i32_6 = arith.constant 0 : i32
    %11 = arith.cmpi eq, %arg1, %c0_i32_6 : i32
    %12 = arith.andi %10, %11 : i1
    %13 = arith.extui %12 : i1 to i32
    %c0_i32_7 = arith.constant 0 : i32
    %14 = arith.cmpi ne, %13, %c0_i32_7 : i32
    scf.if %14 {
      %c0 = arith.constant 0 : index
      %c0_13 = arith.constant 0 : index
      %25 = vector.load %arg5[%c0, %c0_13] : memref<8x128xf32, #tpu.memory_space<vmem>>, vector<8x128xf32>
      %c0_14 = arith.constant 0 : index
      %c0_15 = arith.constant 0 : index
      %26 = vector.load %arg6[%c0_14, %c0_15] : memref<8x128xf32, #tpu.memory_space<vmem>>, vector<8x128xf32>
      %c0_16 = arith.constant 0 : index
      %c0_17 = arith.constant 0 : index
      %27 = vector.load %arg2[%c0_16, %c0_17] : memref<16x128xf32, #tpu.memory_space<vmem>>, vector<8x128xf32>
      %c0_18 = arith.constant 0 : index
      %c0_19 = arith.constant 0 : index
      %28 = vector.load %arg3[%c0_18, %c0_19] : memref<16x128xf32, #tpu.memory_space<vmem>>, vector<8x128xf32>
      %29 = tpu.iota {dimensions = array<i32: 0>} : vector<8x128xi32>
      %c16_i32 = arith.constant 16 : i32
      %30 = arith.muli %arg1, %c16_i32 : i32
      %c0_i32_20 = arith.constant 0 : i32
      %31 = arith.addi %30, %c0_i32_20 : i32
      %32 = vector.broadcast %31 : i32 to vector<8x128xi32>
      %33 = arith.addi %32, %29 : vector<8x128xi32>
      %c16_i32_21 = arith.constant 16 : i32
      %34 = vector.broadcast %c16_i32_21 : i32 to vector<8x128xi32>
      %35 = arith.cmpi slt, %33, %34 : vector<8x128xi32>
      %cst = arith.constant 0x7F800000 : f32
      %36 = vector.broadcast %cst : f32 to vector<8x128xf32>
      %37 = arith.select %35, %27, %36 : vector<8x128xi1>, vector<8x128xf32>
      %cst_22 = arith.constant 0x7F800000 : f32
      %38 = vector.broadcast %cst_22 : f32 to vector<8x128xf32>
      %39 = arith.select %35, %28, %38 : vector<8x128xi1>, vector<8x128xf32>
      %40 = arith.minimumf %25, %37 : vector<8x128xf32>
      %41 = arith.minimumf %26, %39 : vector<8x128xf32>
      %c8 = arith.constant 8 : index
      %c0_23 = arith.constant 0 : index
      %42 = vector.load %arg2[%c8, %c0_23] : memref<16x128xf32, #tpu.memory_space<vmem>>, vector<8x128xf32>
      %c8_24 = arith.constant 8 : index
      %c0_25 = arith.constant 0 : index
      %43 = vector.load %arg3[%c8_24, %c0_25] : memref<16x128xf32, #tpu.memory_space<vmem>>, vector<8x128xf32>
      %44 = tpu.iota {dimensions = array<i32: 0>} : vector<8x128xi32>
      %c16_i32_26 = arith.constant 16 : i32
      %45 = arith.muli %arg1, %c16_i32_26 : i32
      %c8_i32 = arith.constant 8 : i32
      %46 = arith.addi %45, %c8_i32 : i32
      %47 = vector.broadcast %46 : i32 to vector<8x128xi32>
      %48 = arith.addi %47, %44 : vector<8x128xi32>
      %c16_i32_27 = arith.constant 16 : i32
      %49 = vector.broadcast %c16_i32_27 : i32 to vector<8x128xi32>
      %50 = arith.cmpi slt, %48, %49 : vector<8x128xi32>
      %cst_28 = arith.constant 0x7F800000 : f32
      %51 = vector.broadcast %cst_28 : f32 to vector<8x128xf32>
      %52 = arith.select %50, %42, %51 : vector<8x128xi1>, vector<8x128xf32>
      %cst_29 = arith.constant 0x7F800000 : f32
      %53 = vector.broadcast %cst_29 : f32 to vector<8x128xf32>
      %54 = arith.select %50, %43, %53 : vector<8x128xi1>, vector<8x128xf32>
      %55 = arith.minimumf %40, %52 : vector<8x128xf32>
      %56 = arith.minimumf %41, %54 : vector<8x128xf32>
      %57 = vector.shape_cast %55 : vector<8x128xf32> to vector<1x8x128xf32>
      %cst_30 = arith.constant dense<0x7F800000> : vector<1xf32>
      %58 = vector.multi_reduction <minimumf>, %57, %cst_30 [1, 2] : vector<1x8x128xf32> to vector<1xf32>
      %59 = vector.shape_cast %58 : vector<1xf32> to vector<1x1x1xf32>
      %60 = vector.extract %59[0, 0, 0] : f32 from vector<1x1x1xf32>
      %61 = math.absf %60 : f32
      %cst_31 = arith.constant 1.00000095 : f32
      %62 = arith.addf %61, %cst_31 : f32
      %63 = vector.shape_cast %56 : vector<8x128xf32> to vector<1x8x128xf32>
      %cst_32 = arith.constant dense<0x7F800000> : vector<1xf32>
      %64 = vector.multi_reduction <minimumf>, %63, %cst_32 [1, 2] : vector<1x8x128xf32> to vector<1xf32>
      %65 = vector.shape_cast %64 : vector<1xf32> to vector<1x1x1xf32>
      %66 = vector.extract %65[0, 0, 0] : f32 from vector<1x1x1xf32>
      %67 = math.absf %66 : f32
      %cst_33 = arith.constant 1.00000095 : f32
      %68 = arith.addf %67, %cst_33 : f32
      %69 = vector.broadcast %62 : f32 to vector<8x128xf32>
      %c0_34 = arith.constant 0 : index
      %c0_35 = arith.constant 0 : index
      %70 = vector.load %arg5[%c0_34, %c0_35] : memref<8x128xf32, #tpu.memory_space<vmem>>, vector<8x128xf32>
      tpu.vector_store %arg5[%c0_34, %c0_35], %69 {strides = array<i32>} : memref<8x128xf32, #tpu.memory_space<vmem>>, vector<8x128xf32>,
      %71 = vector.broadcast %68 : f32 to vector<8x128xf32>
      %c0_36 = arith.constant 0 : index
      %c0_37 = arith.constant 0 : index
      %72 = vector.load %arg6[%c0_36, %c0_37] : memref<8x128xf32, #tpu.memory_space<vmem>>, vector<8x128xf32>
      tpu.vector_store %arg6[%c0_36, %c0_37], %71 {strides = array<i32>} : memref<8x128xf32, #tpu.memory_space<vmem>>, vector<8x128xf32>,
    } else {
    }
    %c1_i32 = arith.constant 1 : i32
    %15 = arith.cmpi eq, %arg0, %c1_i32 : i32
    %c0_i32_8 = arith.constant 0 : i32
    %16 = arith.cmpi ne, %arg1, %c0_i32_8 : i32
    %17 = arith.andi %15, %16 : i1
    %18 = arith.extui %17 : i1 to i32
    %c0_i32_9 = arith.constant 0 : i32
    %19 = arith.cmpi ne, %18, %c0_i32_9 : i32
    scf.if %19 {
      %c0 = arith.constant 0 : index
      %c0_13 = arith.constant 0 : index
      %25 = vector.load %arg5[%c0, %c0_13] : memref<8x128xf32, #tpu.memory_space<vmem>>, vector<8x128xf32>
      %c0_14 = arith.constant 0 : index
      %c0_15 = arith.constant 0 : index
      %26 = vector.load %arg6[%c0_14, %c0_15] : memref<8x128xf32, #tpu.memory_space<vmem>>, vector<8x128xf32>
      %c0_16 = arith.constant 0 : index
      %c0_17 = arith.constant 0 : index
      %27 = vector.load %arg7[%c0_16, %c0_17] : memref<8x128xf32, #tpu.memory_space<vmem>>, vector<8x128xf32>
      %c0_18 = arith.constant 0 : index
      %c0_19 = arith.constant 0 : index
      %28 = vector.load %arg2[%c0_18, %c0_19] : memref<16x128xf32, #tpu.memory_space<vmem>>, vector<8x128xf32>
      %c0_20 = arith.constant 0 : index
      %c0_21 = arith.constant 0 : index
      %29 = vector.load %arg3[%c0_20, %c0_21] : memref<16x128xf32, #tpu.memory_space<vmem>>, vector<8x128xf32>
      %30 = arith.addf %28, %25 : vector<8x128xf32>
      %31 = arith.addf %29, %26 : vector<8x128xf32>
      %32 = arith.divf %30, %31 : vector<8x128xf32>
      %33 = math.log %32 : vector<8x128xf32>
      %34 = arith.mulf %33, %33 : vector<8x128xf32>
      %35 = arith.addf %27, %34 : vector<8x128xf32>
      %c8 = arith.constant 8 : index
      %c0_22 = arith.constant 0 : index
      %36 = vector.load %arg2[%c8, %c0_22] : memref<16x128xf32, #tpu.memory_space<vmem>>, vector<8x128xf32>
      %c8_23 = arith.constant 8 : index
      %c0_24 = arith.constant 0 : index
      %37 = vector.load %arg3[%c8_23, %c0_24] : memref<16x128xf32, #tpu.memory_space<vmem>>, vector<8x128xf32>
      %38 = arith.addf %36, %25 : vector<8x128xf32>
      %39 = arith.addf %37, %26 : vector<8x128xf32>
      %40 = arith.divf %38, %39 : vector<8x128xf32>
      %41 = math.log %40 : vector<8x128xf32>
      %42 = arith.mulf %41, %41 : vector<8x128xf32>
      %43 = arith.addf %35, %42 : vector<8x128xf32>
      %c0_25 = arith.constant 0 : index
      %c0_26 = arith.constant 0 : index
      %44 = vector.load %arg7[%c0_25, %c0_26] : memref<8x128xf32, #tpu.memory_space<vmem>>, vector<8x128xf32>
      tpu.vector_store %arg7[%c0_25, %c0_26], %43 {strides = array<i32>} : memref<8x128xf32, #tpu.memory_space<vmem>>, vector<8x128xf32>,
    } else {
    }
    %c1_i32_10 = arith.constant 1 : i32
    %20 = arith.cmpi eq, %arg0, %c1_i32_10 : i32
    %c0_i32_11 = arith.constant 0 : i32
    %21 = arith.cmpi eq, %arg1, %c0_i32_11 : i32
    %22 = arith.andi %20, %21 : i1
    %23 = arith.extui %22 : i1 to i32
    %c0_i32_12 = arith.constant 0 : i32
    %24 = arith.cmpi ne, %23, %c0_i32_12 : i32
    scf.if %24 {
      %c0 = arith.constant 0 : index
      %c0_13 = arith.constant 0 : index
      %25 = vector.load %arg5[%c0, %c0_13] : memref<8x128xf32, #tpu.memory_space<vmem>>, vector<8x128xf32>
      %c0_14 = arith.constant 0 : index
      %c0_15 = arith.constant 0 : index
      %26 = vector.load %arg6[%c0_14, %c0_15] : memref<8x128xf32, #tpu.memory_space<vmem>>, vector<8x128xf32>
      %c0_16 = arith.constant 0 : index
      %c0_17 = arith.constant 0 : index
      %27 = vector.load %arg7[%c0_16, %c0_17] : memref<8x128xf32, #tpu.memory_space<vmem>>, vector<8x128xf32>
      %c0_18 = arith.constant 0 : index
      %c0_19 = arith.constant 0 : index
      %28 = vector.load %arg2[%c0_18, %c0_19] : memref<16x128xf32, #tpu.memory_space<vmem>>, vector<8x128xf32>
      %c0_20 = arith.constant 0 : index
      %c0_21 = arith.constant 0 : index
      %29 = vector.load %arg3[%c0_20, %c0_21] : memref<16x128xf32, #tpu.memory_space<vmem>>, vector<8x128xf32>
      %30 = arith.addf %28, %25 : vector<8x128xf32>
      %31 = arith.addf %29, %26 : vector<8x128xf32>
      %32 = arith.divf %30, %31 : vector<8x128xf32>
      %33 = math.log %32 : vector<8x128xf32>
      %34 = arith.mulf %33, %33 : vector<8x128xf32>
      %35 = tpu.iota {dimensions = array<i32: 0>} : vector<8x128xi32>
      %c16_i32 = arith.constant 16 : i32
      %36 = arith.muli %arg1, %c16_i32 : i32
      %c0_i32_22 = arith.constant 0 : i32
      %37 = arith.addi %36, %c0_i32_22 : i32
      %38 = vector.broadcast %37 : i32 to vector<8x128xi32>
      %39 = arith.addi %38, %35 : vector<8x128xi32>
      %c16_i32_23 = arith.constant 16 : i32
      %40 = vector.broadcast %c16_i32_23 : i32 to vector<8x128xi32>
      %41 = arith.cmpi slt, %39, %40 : vector<8x128xi32>
      %cst = arith.constant 0.000000e+00 : f32
      %42 = vector.broadcast %cst : f32 to vector<8x128xf32>
      %43 = arith.select %41, %34, %42 : vector<8x128xi1>, vector<8x128xf32>
      %44 = arith.addf %27, %43 : vector<8x128xf32>
      %c8 = arith.constant 8 : index
      %c0_24 = arith.constant 0 : index
      %45 = vector.load %arg2[%c8, %c0_24] : memref<16x128xf32, #tpu.memory_space<vmem>>, vector<8x128xf32>
      %c8_25 = arith.constant 8 : index
      %c0_26 = arith.constant 0 : index
      %46 = vector.load %arg3[%c8_25, %c0_26] : memref<16x128xf32, #tpu.memory_space<vmem>>, vector<8x128xf32>
      %47 = arith.addf %45, %25 : vector<8x128xf32>
      %48 = arith.addf %46, %26 : vector<8x128xf32>
      %49 = arith.divf %47, %48 : vector<8x128xf32>
      %50 = math.log %49 : vector<8x128xf32>
      %51 = arith.mulf %50, %50 : vector<8x128xf32>
      %52 = tpu.iota {dimensions = array<i32: 0>} : vector<8x128xi32>
      %c16_i32_27 = arith.constant 16 : i32
      %53 = arith.muli %arg1, %c16_i32_27 : i32
      %c8_i32 = arith.constant 8 : i32
      %54 = arith.addi %53, %c8_i32 : i32
      %55 = vector.broadcast %54 : i32 to vector<8x128xi32>
      %56 = arith.addi %55, %52 : vector<8x128xi32>
      %c16_i32_28 = arith.constant 16 : i32
      %57 = vector.broadcast %c16_i32_28 : i32 to vector<8x128xi32>
      %58 = arith.cmpi slt, %56, %57 : vector<8x128xi32>
      %cst_29 = arith.constant 0.000000e+00 : f32
      %59 = vector.broadcast %cst_29 : f32 to vector<8x128xf32>
      %60 = arith.select %58, %51, %59 : vector<8x128xi1>, vector<8x128xf32>
      %61 = arith.addf %44, %60 : vector<8x128xf32>
      %cst_30 = arith.constant dense<0.000000e+00> : vector<8xf32>
      %62 = vector.multi_reduction <add>, %61, %cst_30 [1] : vector<8x128xf32> to vector<8xf32>
      %63 = vector.shape_cast %62 : vector<8xf32> to vector<8x1xf32>
      %cst_31 = arith.constant dense<0.000000e+00> : vector<1xf32>
      %64 = vector.multi_reduction <add>, %63, %cst_31 [0] : vector<8x1xf32> to vector<1xf32>
      %65 = vector.shape_cast %64 : vector<1xf32> to vector<1x1xf32>
      %cst_32 = arith.constant 4.8828125E-4 : f32
      %66 = vector.broadcast %cst_32 : f32 to vector<1x1xf32>
      %67 = arith.mulf %65, %66 : vector<1x1xf32>
      %68 = math.sqrt %67 : vector<1x1xf32>
      %c0_33 = arith.constant 0 : index
      %c0_34 = arith.constant 0 : index
      %69 = vector.load %arg4[%c0_33, %c0_34] : memref<1x1xf32, #tpu.memory_space<vmem>>, vector<1x1xf32>
      tpu.vector_store %arg4[%c0_33, %c0_34], %68 {strides = array<i32>} : memref<1x1xf32, #tpu.memory_space<vmem>>, vector<1x1xf32>,
    } else {
    }
    return
  }
  func.func @transform_0(%arg0: i32, %arg1: i32) -> (i32, i32) {
    %c0_i32 = arith.constant 0 : i32
    %c0_i32_0 = arith.constant 0 : i32
    return %arg1, %c0_i32 : i32, i32
  }
  func.func @transform_1(%arg0: i32, %arg1: i32) -> (i32, i32) {
    %c0_i32 = arith.constant 0 : i32
    %c0_i32_0 = arith.constant 0 : i32
    return %arg1, %c0_i32 : i32, i32
  }
  func.func @transform_2(%arg0: i32, %arg1: i32) -> (i32, i32) {
    %c0_i32 = arith.constant 0 : i32
    %c0_i32_0 = arith.constant 0 : i32
    %c0_i32_1 = arith.constant 0 : i32
    return %c0_i32, %c0_i32_0 : i32, i32
  }
}

</mosaic_0001>

<bundles_post_ra>
// kernel: tpu_custom_call.1
= control target key start
LH: loop header
LB: loop body
LE: loop exit
PB: predicated region body
PF: predicated region fallthrough
CT: control target
= control target key end

     0   :  { %7 = vsyncpa [#allocation6], 0  ;;  %s765_s0 = inlined_call_operand.hbm [shape: f32[16,128], index: 0, kind: input, shape index: {}]   ;;  %s766_s1 = inlined_call_operand.hbm [shape: f32[16,128], index: 1, kind: input, shape index: {}]   ;;  %s767_s2 = inlined_call_operand.hbm [shape: f32[1,1], index: 2, kind: output, shape index: {}]  }
   0x1   :  { %8 = vsyncpa [#allocation9], 0 }
   0x2   :  { %9 = vsyncpa [#allocation7], 0  ;;  %s697_s9 = smov 0   ;;  %s699_s10 = smov 0  }
   0x3   :  { %s701_s11 = smov 0  }
   0x4 LB: > { %s466_s12 = sadd.s32 4294967295, %s673_s11   ;;  %s27_s13 = sadd.s32 1, %s669_s10  ;;  %s673_s11 = sphi %s701_s11, %s15_s11   ;;  %s669_s10 = sphi %s699_s10, %s771_s10   ;;  %s665_s9 = sphi %s697_s9, %s770_s9  }
   0x5   : > { %p29_p0 = scmp.ge.s32.totalorder %s27_s13, 2  ;;  %p467_p1 = scmp.ge.s32.totalorder %s673_s11, 1 }
   0x6   : > { %p105_p2 = scmp.lt.s32.totalorder %s673_s11, 3  ;;  %p724_p4 = scmp.eq.s32.totalorder %s466_s12, 0 }
   0x7   : > { %s773_s13 = smov (%p29_p0, %s27_s13), 0  ;;  %s119_s18 = sshll.u32 %s765_s0, 4  ;;  %s120_s18 = int_to_ptr.hbm [resolvable:$true] %s119_s18 }
   0x8   : > { %p718_p3 = pnand %p467_p1, %p105_p2  ;;  %s675_s19 = smov [#allocation5]  }
   0x9   : > { %s121_s20 = sshll.u32 %s675_s19, 4  ;;  %s136_s23 = sshll.u32 %s766_s1, 4  ;;  %s122_s20 = int_to_ptr.vmem [resolvable:$true] %s121_s20  ;;  %s137_s23 = int_to_ptr.hbm [resolvable:$true] %s136_s23 }
   0xa   : > { %p497_p5 = pneg %p718_p3  ;;  %s676_s24 = smov 128  }
   0xb   : > { %s677_s25 = smov 8   ;;  %s678_s26 = smov [#allocation8]  }
   0xc   : > { %p498_p6 = pnand %p724_p4, %p497_p5  ;;  %s138_s27 = sshll.u32 %s678_s26, 4  ;;  %s139_s27 = int_to_ptr.vmem [resolvable:$true] %s138_s27 }
   0xd   : > { %154 = sbr.rel (%p718_p3) target bundleno = 427 (0x1ab), region = 28 }
   0xe   : > { %500 = dma.hbm_to_vmem [thread:$0]  (!%p498_p6), %s120_s18, 256, %s122_s20, [#allocation6], %s676_s24, %s676_s24, %s677_s25  }
   0xf   : > { %503 = dma.hbm_to_vmem [thread:$0]  (!%p498_p6), %s137_s23, 256, %s139_s27, [#allocation9], %s676_s24, %s676_s24, %s677_s25  }
  0x12   : > { %652 = dma.done.wait (%p724_p4), [#allocation6], 256  }
  0x13   : > { %654 = vsyncadd (%p724_p4), [#allocation6], 4294967040 }
  0x14   : > { %656 = dma.done.wait (%p724_p4), [#allocation9], 256  }
  0x15   : > { %658 = vsyncadd (%p724_p4), [#allocation9], 4294967040  ;;  %p174_p7 = scmp.eq.s32.totalorder %s665_s9, 0 }
  0x16   : > { %v679_v0 = vmov (%p174_p7), inf   ;;  %v680_v1 = vmov (%p174_p7), 0.0  }
  0x17   : > { %179 = sbr.rel (!%p174_p7) target bundleno = 28 (0x1c), region = 40  ;;  %180 = vst [vmem:[#allocation2] sm:$0xff] (%p174_p7), %v679_v0 }
  0x18   : > { %181 = vst [vmem:[#allocation3] sm:$0xff] (%p174_p7), %v679_v0 }
  0x19   : > { %182 = vst [vmem:[#allocation4] sm:$0xff] (%p174_p7), %v680_v1 }
  0x1c PF: > { %201 = sbr.rel (!%p174_p7) target bundleno = 226 (0xe2), region = 48  ;;  %v204_v3 = vld [vmem:[#allocation5] sm:$0xff] (%p174_p7)  ;;  %v216_v4 = vld [vmem:[#allocation5 + $0x8] sm:$0xff] (%p174_p7)  ;;  %v205_v7 = vld [vmem:[#allocation8] sm:$0xff] (%p174_p7) }
  0x1d   : > { %v217_v10 = vld [vmem:[#allocation8 + $0x8] sm:$0xff] (%p174_p7) }
  0x1e   : > { %v202_v2 = vld [vmem:[#allocation2] sm:$0xff] (%p174_p7) }
  0x1f   : > { %v214_v5 = vmin.f32 (%p174_p7), %v202_v2, %v204_v3  ;;  %v203_v6 = vld [vmem:[#allocation3] sm:$0xff] (%p174_p7) }
  0x20   : > { %v215_v9 = vmin.f32 (%p174_p7), %v203_v6, %v205_v7 }
  0x21   : > { %v224_v8 = vmin.f32 %v214_v5, %v216_v4 }
  0x22   : > { %v225_v11 = vmin.f32 %v215_v9, %v217_v10 }
  0x23   : > { %226 = vmin.xlane.f32.xlu0 %v224_v8 }
  0x2b   : > { %237 = vmin.xlane.f32.xlu0 %v225_v11 }
  0x96   : > { %v227_v12 = vpop.xlane.xlu0 %226 }
  0x97   : > { %v228_v13 = vrot.slane %v227_v12, 4 }
  0x99   : > { %v229_v14 = vmin.f32 %v227_v12, %v228_v13 }
  0x9b   : > { %v230_v15 = vrot.slane %v229_v14, 2 }
  0x9d   : > { %v231_v16 = vmin.f32 %v229_v14, %v230_v15 }
  0x9e   : > { %v238_v17 = vpop.xlane.xlu0 %237 }
  0x9f   : > { %v239_v18 = vrot.slane %v238_v17, 4  ;;  %v232_v19 = vrot.slane %v231_v16, 1 }
  0xa1   : > { %v240_v20 = vmin.f32 %v238_v17, %v239_v18  ;;  %v233_v21 = vmin.f32 %v231_v16, %v232_v19 }
  0xa3   : > { %v241_v22 = vrot.slane %v240_v20, 2  ;;  %481 = vpush %v233_v21 }
  0xa5   : > { %v242_v23 = vmin.f32 %v240_v20, %v241_v22 }
  0xa7   : > { %v243_v24 = vrot.slane %v242_v23, 1 }
  0xa9   : > { %v244_v25 = vmin.f32 %v242_v23, %v243_v24 }
  0xab   : > { %483 = vpush %v244_v25 }
  0xd4   : > { %s482_s28 = spop %481 }
  0xd5   : > { %s235_s29 = sand.u32 2147483647, %s482_s28 }
  0xd6   : > { %s236_s30 = sadd.f32 1.000001, %s235_s29 }
  0xd8   : > { %v248_v26 = vstv %s236_s30 }
  0xd9   : > { %249 = vst [vmem:[#allocation2] sm:$0xff] %v248_v26 }
  0xdc   : > { %s484_s3 = spop %483 }
  0xdd   : > { %s246_s4 = sand.u32 2147483647, %s484_s3 }
  0xde   : > { %s247_s5 = sadd.f32 1.000001, %s246_s4 }
  0xe0   : > { %v250_v27 = vstv %s247_s5 }
  0xe1   : > { %251 = vst [vmem:[#allocation3] sm:$0xff] %v250_v27 }
  0xe2 PF: > { %p252_p8 = scmp.eq.s32.totalorder %s665_s9, 1 }
  0xe3   : > { %v315_v29 = vld [vmem:[#allocation8] sm:$0xff] (%p252_p8)  ;;  %v345_v31 = vld [vmem:[#allocation8 + $0x8] sm:$0xff] (%p252_p8)  ;;  %v311_v41 = vld [vmem:[#allocation2] sm:$0xff] (%p252_p8)  ;;  %vm393_vm9 = vcmask (%p252_p8), 0  }
  0xe4   : > { %310 = sbr.rel (!%p252_p8) target bundleno = 421 (0x1a5), region = 56  ;;  %v314_v42 = vld [vmem:[#allocation5] sm:$0xff] (%p252_p8)  ;;  %v344_v46 = vld [vmem:[#allocation5 + $0x8] sm:$0xff] (%p252_p8)  ;;  %v313_v63 = vld [vmem:[#allocation4] sm:$0xff] (%p252_p8) }
  0xe5   : > { %v316_v49 = vadd.f32 (%p252_p8), %v314_v42, %v311_v41  ;;  %v346_v52 = vadd.f32 (%p252_p8), %v344_v46, %v311_v41 }
  0xe8   : > { %v312_v28 = vld [vmem:[#allocation3] sm:$0xff] (%p252_p8) }
  0xe9   : > { %v317_v30 = vadd.f32 %v315_v29, %v312_v28  ;;  %v347_v32 = vadd.f32 %v345_v31, %v312_v28 }
  0xeb   : > { %541 = vrcp.f32 %v317_v30  ;;  %vm323_vm0 = vweird.f32 %v317_v30  ;;  %v329_v36 = vand.u32 2147483648, %v317_v30  ;;  %v327_v39 = vand.u32 2147483647, %v317_v30 }
  0xec   : > { %543 = vrcp.f32 %v347_v32  ;;  %v359_v40 = vand.u32 2147483648, %v347_v32  ;;  %vm353_vm2 = vweird.f32 %v347_v32  ;;  %v357_v44 = vand.u32 2147483647, %v347_v32 }
  0xed   : > { %v330_v47 = vor.u32 1.1754944e-38, %v329_v36  ;;  %vm328_vm5 = vcmp.eq.f32.partialorder %v327_v39, 8.507059e+37 }
  0xee   : > { %v360_v51 = vor.u32 1.1754944e-38, %v359_v40  ;;  %vm358_vm7 = vcmp.eq.f32.partialorder %v357_v44, 8.507059e+37 }
  0xf1   : > { %v542_v33 = vpop.eup %541 }
  0xf2   : > { %v544_v34 = vpop.eup %543  ;;  %v319_v35 = vmul.f32 %v542_v33, %v317_v30  ;;  %vm324_vm1 = vweird.f32 %v542_v33 }
  0xf3   : > { %v349_v37 = vmul.f32 %v544_v34, %v347_v32  ;;  %vm354_vm3 = vweird.f32 %v544_v34  ;;  %vm325_vm4 = vmor %vm323_vm0, %vm324_vm1 }
  0xf4   : > { %v320_v38 = vsub.f32 1.0, %v319_v35  ;;  %vm355_vm6 = vmor %vm353_vm2, %vm354_vm3 }
  0xf5   : > { %v350_v43 = vsub.f32 1.0, %v349_v37 }
  0xf6   : > { %v321_v45 = vmul.f32 %v542_v33, %v320_v38 }
  0xf7   : > { %v351_v48 = vmul.f32 %v544_v34, %v350_v43 }
  0xf8   : > { %v322_v50 = vadd.f32 %v542_v33, %v321_v45 }
  0xf9   : > { %v352_v53 = vadd.f32 %v544_v34, %v351_v48 }
  0xfa   : > { %v326_v54 = vsel %vm325_vm4, %v542_v33, %v322_v50 }
  0xfb   : > { %v331_v55 = vsel %vm328_vm5, %v330_v47, %v326_v54  ;;  %v356_v56 = vsel %vm355_vm6, %v544_v34, %v352_v53 }
  0xfc   : > { %v332_v57 = vmul.f32 %v331_v55, %v316_v49  ;;  %v361_v58 = vsel %vm358_vm7, %v360_v51, %v356_v56 }
  0xfd   : > { %v362_v59 = vmul.f32 %v361_v58, %v346_v52 }
  0xfe   : > { %545 = vlog2.f32 %v332_v57 }
  0xff   : > { %547 = vlog2.f32 %v362_v59 }
 0x104   : > { %v546_v60 = vpop.eup %545 }
 0x105   : > { %v548_v61 = vpop.eup %547  ;;  %v334_v62 = vmul.f32 0.6931472, %v546_v60 }
 0x106   : > { %v364_v0 = vmul.f32 0.6931472, %v548_v61 }
 0x107   : > { %v335_v1 = vmul.f32 %v334_v62, %v334_v62 }
 0x108   : > { %v365_v2 = vmul.f32 %v364_v0, %v364_v0 }
 0x109   : > { %v343_v3 = vadd.f32 %v335_v1, %v313_v63 }
 0x10b   : > { %v371_v4 = vadd.f32 %v365_v2, %v343_v3 }
 0x10d   : > { %372 = vadd.xlane.f32.xlu0 %v371_v4 }
 0x180   : > { %v373_v5 = vpop.xlane.xlu0 %372 }
 0x181   : > { %v374_v6 = vrot.slane %v373_v5, 4 }
 0x183   : > { %v375_v7 = vadd.f32 %v374_v6, %v373_v5 }
 0x185   : > { %v376_v8 = vrot.slane %v375_v7, 2 }
 0x187   : > { %v377_v9 = vadd.f32 %v376_v8, %v375_v7 }
 0x189   : > { %v378_v10 = vrot.slane %v377_v9, 1 }
 0x18b   : > { %v379_v11 = vadd.f32 %v378_v10, %v377_v9 }
 0x18d   : > { %v380_v12 = vmul.f32 0.00048828125, %v379_v11 }
 0x18f   : > { %549 = vrsqrt.f32 %v380_v12  ;;  %vm388_vm8 = vcmp.eq.f32.partialorder %v380_v12, inf  ;;  %v391_v20 = vand.u32 2147483648, %v380_v12  ;;  %vm390_vm10 = vcmp.eq.f32.partialorder %v380_v12, 0.0 }
 0x195   : > { %v550_v13 = vpop.eup %549 }
 0x196   : > { %v382_v14 = vmul.f32 %v550_v13, %v380_v12 }
 0x198   : > { %v383_v15 = vmul.f32 %v550_v13, %v382_v14 }
 0x19a   : > { %v384_v16 = vmul.f32 0.5, %v383_v15 }
 0x19c   : > { %v385_v17 = vsub.f32 1.5, %v384_v16 }
 0x19e   : > { %v386_v18 = vmul.f32 %v550_v13, %v385_v17 }
 0x1a0   : > { %v387_v19 = vmul.f32 %v386_v18, %v380_v12 }
 0x1a2   : > { %v389_v21 = vsel %vm388_vm8, %v380_v12, %v387_v19 }
 0x1a3   : > { %v392_v22 = vsel %vm390_vm10, %v391_v20, %v389_v21 }
 0x1a4   : > { %394 = vst.msk [vmem:[#allocation10] sm:$0x1] %vm393_vm9, %v392_v22 }
 0x1a5 PF: > { %p508_p9 = scmp.eq.s32.totalorder %s466_s12, 1  ;;  %s403_s8 = sshll.u32 %s767_s2, 4  ;;  %s404_s8 = int_to_ptr.hbm [resolvable:$true] %s403_s8 }
 0x1a6   : > { %s681_s9 = smov [#allocation10]  }
 0x1a7   : > { %s401_s14 = sshll.u32 %s681_s9, 4  ;;  %s402_s14 = int_to_ptr.vmem [resolvable:$true] %s401_s14 }
 0x1a8   : > { %494 = dma.vmem_to_hbm [thread:$0]  (%p508_p9), %s402_s14, 16, %s404_s8, [#allocation7]  }
 0x1a9   : > { %660 = dma.done.wait (%p508_p9), [#allocation7], 16  }
 0x1aa   : > { %662 = vsyncadd (%p508_p9), [#allocation7], 4294967280 }
 0x1ab PF: > { %s15_s11 = sadd.s32 1, %s673_s11   ;;  %s770_s9 = smov %s669_s10 }
 0x1ac   : > { %p12_p10 = scmp.ge.s32.totalorder %s15_s11, 4   ;;  %s771_s10 = smov %s773_s13 }
 0x1ae   :  { %14 = sbr.rel (!%p12_p10) target bundleno = 4 (0x4), region = 83 }
 0x1b3   :  { %417 = vsyncpa [#allocation6], 1 }
 0x1b4   :  { %419 = vsyncpa [#allocation6 + $0x1], 1 }
 0x1b5   :  { %420 = vsyncpa [#allocation9], 1 }
 0x1b6   :  { %421 = vsyncpa [#allocation7], 1 }
 0x1b7   :  { %423 = vsyncpa [#allocation7 + $0x1], 1 }

</bundles_post_ra>
